<compile_context>
chip_gen: v6e
topology: v6e:2x2x1
jax: 0.10.0
libtpu: 0.0.40
codegen_flags: <defaults>
</compile_context>

<pallas_src>
import jax
import jax.numpy as jnp
from jax.experimental import pallas as pl
from jax.experimental.pallas import tpu as pltpu


_FAST_PATH_ELEMS = 4096                 # below this, plain jnp (fused by XLA)
_TARGET_BLOCK_BYTES = 2 * 1024 * 1024   # ~2 MiB input block per pipeline buffer
_MAX_BLOCK_BYTES = 8 * 1024 * 1024      # bail to jnp for pathological ragged rows
_LANE_WIDTHS = (4096, 2048, 1024, 512, 256, 128)


def _round_up(x, m):
    return ((x + m - 1) // m) * m


# ----------------------------- Pallas kernel --------------------------------

def _gp_linear_mean_kernel(coef_ref, t_ref, o_ref):
    # coef_ref: SMEM (2,) f32 -> [slope, intercept]
    slope = coef_ref[0]
    intercept = coef_ref[1]
    x = t_ref[...].astype(jnp.float32)      # cast in-register; hidden under DMA
    o_ref[...] = (x * slope + intercept).astype(o_ref.dtype)


# ------------------------------ wrapper --------------------------------------

def gp_linear_mean(t, slope, intercept):
    """y = slope * t + intercept,  t: (..., N) -> (..., N)."""
    t = jnp.asarray(t)
    orig_shape = t.shape
    n_elem = int(t.size)

    # Keep floating inputs narrow in HBM (bf16 stays bf16); promote ints to f32.
    out_dtype = t.dtype if jnp.issubdtype(t.dtype, jnp.floating) else jnp.float32

    slope32 = jnp.asarray(slope, jnp.float32)
    intercept32 = jnp.asarray(intercept, jnp.float32)

    def _jnp_path():
        return (t.astype(jnp.float32) * slope32 + intercept32).astype(out_dtype)

    # Fast path: tiny tensors — kernel launch overhead dwarfs the op.
    if n_elem < _FAST_PATH_ELEMS:
        return _jnp_path()

    # --- copy-free 2-D view of t ---------------------------------------------
    cols = None
    for c in _LANE_WIDTHS:
        if n_elem % c == 0:
            cols = c
            break
    if cols is not None:
        slab = t.reshape(n_elem // cols, cols)          # lane-dense, free reshape
    else:
        # Ragged total: keep the native trailing dim as a full-extent lane dim
        # (masked stores if N % 128 != 0, but zero extra HBM passes).
        slab = t.reshape(-1, orig_shape[-1])
    rows, cols = slab.shape

    itemsize = max(slab.dtype.itemsize, jnp.dtype(out_dtype).itemsize)
    if min(rows, 8) * cols * itemsize > _MAX_BLOCK_BYTES:
        # Even a minimal 8-row block would blow the VMEM budget (e.g. a huge,
        # ragged trailing dim) — let XLA handle it.
        return _jnp_path()

    # --- choose the row block (multiple of 8, or full extent) ----------------
    target_rows = max(8, _TARGET_BLOCK_BYTES // (cols * itemsize))
    row_block = (target_rows // 8) * 8
    if rows >= 16:
        # Give v7x's second TensorCore work: force >= 2 grid steps.
        row_block = min(row_block, _round_up(pl.cdiv(rows, 2), 8))
    if row_block >= rows:
        row_block = rows                                 # single full-extent block
    grid = (pl.cdiv(rows, row_block),)                   # partial last block clamps

    coef = jnp.stack([slope32, intercept32])

    cost = pl.CostEstimate(
        flops=2 * n_elem,
        transcendentals=0,
        bytes_accessed=n_elem * slab.dtype.itemsize
        + n_elem * jnp.dtype(out_dtype).itemsize,
    )

    out = pl.pallas_call(
        _gp_linear_mean_kernel,
        out_shape=jax.ShapeDtypeStruct((rows, cols), out_dtype),
        grid=grid,
        in_specs=[
            pl.BlockSpec(memory_space=pltpu.MemorySpace.SMEM),       # coef (2,)
            pl.BlockSpec((row_block, cols), lambda i: (i, 0)),       # t slab
        ],
        out_specs=pl.BlockSpec((row_block, cols), lambda i: (i, 0)),
        compiler_params=pltpu.CompilerParams(
            dimension_semantics=("parallel",),
            vmem_limit_bytes=32 * 1024 * 1024,
        ),
        cost_estimate=cost,
    )(coef, slab)

    return out.reshape(orig_shape)                        # free reshape (no slicing)


# ----------------------------- JAX reference ----------------------------------

def reference(t, slope, intercept):
    return slope * t + intercept


# --------------------------------- main ---------------------------------------

if __name__ == "__main__":
    key = jax.random.PRNGKey(0)
    slope = jnp.float32(0.75)       # learnable scalar parameter
    intercept = jnp.float32(-0.25)  # learnable scalar parameter

    test_shapes = [
        (2, 8, 4096),   # lane-dense Pallas path, multi-step grid
        (3, 5, 700),    # ragged total -> native (M, N) view, full-extent block
        (2, 4, 16),     # tiny -> jnp fast path
    ]

    for i, shp in enumerate(test_shapes):
        k = jax.random.fold_in(key, i)
        t = jax.random.normal(k, shp, jnp.float32)
        y = gp_linear_mean(t, slope, intercept)
        jax.block_until_ready(y)
        y_ref = reference(t, slope, intercept)
        assert y.shape == t.shape, f"shape mismatch for {shp}"
        assert y.dtype == t.dtype, f"dtype mismatch for {shp}"
        assert jnp.allclose(y, y_ref, atol=1e-6, rtol=1e-6), f"mismatch for {shp}"

    print("KERNEL_OK")
</pallas_src>

<mosaic_0001>
module attributes {stable_mosaic.version = 11 : i64} {
  func.func @_gp_linear_mean_kernel(%arg0: i32, %arg1: memref<2xf32, #tpu.memory_space<smem>>, %arg2: memref<8x4096xf32, #tpu.memory_space<vmem>>, %arg3: memref<8x4096xf32, #tpu.memory_space<vmem>>) attributes {dimension_semantics = [#tpu.dimension_semantics<parallel>], iteration_bounds = array<i64: 2>, scalar_prefetch = 0 : i64, scratch_operands = 0 : i64, tpu.core_type = #tpu.core_type<tc>, window_params = [{transform_indices = @transform_0, window_bounds = array<i64: 2>}, {transform_indices = @transform_1, window_bounds = array<i64: 8, 4096>}, {transform_indices = @transform_2, window_bounds = array<i64: 8, 4096>}]} {
    %c0 = arith.constant 0 : index
    %0 = memref.load %arg1[%c0] : memref<2xf32, #tpu.memory_space<smem>>
    %c1 = arith.constant 1 : index
    %1 = memref.load %arg1[%c1] : memref<2xf32, #tpu.memory_space<smem>>
    %c0_0 = arith.constant 0 : index
    %c0_1 = arith.constant 0 : index
    %2 = vector.load %arg2[%c0_0, %c0_1] : memref<8x4096xf32, #tpu.memory_space<vmem>>, vector<8x4096xf32>
    %3 = vector.broadcast %0 : f32 to vector<8x4096xf32>
    %4 = arith.mulf %2, %3 : vector<8x4096xf32>
    %5 = vector.broadcast %1 : f32 to vector<8x4096xf32>
    %6 = arith.addf %4, %5 : vector<8x4096xf32>
    %c0_2 = arith.constant 0 : index
    %c0_3 = arith.constant 0 : index
    %7 = vector.load %arg3[%c0_2, %c0_3] : memref<8x4096xf32, #tpu.memory_space<vmem>>, vector<8x4096xf32>
    tpu.vector_store %arg3[%c0_2, %c0_3], %6 {strides = array<i32>} : memref<8x4096xf32, #tpu.memory_space<vmem>>, vector<8x4096xf32>,
    return
  }
  func.func @transform_0(%arg0: i32) -> i32 {
    %c0_i32 = arith.constant 0 : i32
    %c0_i32_0 = arith.constant 0 : i32
    return %c0_i32 : i32
  }
  func.func @transform_1(%arg0: i32) -> (i32, i32) {
    %c0_i32 = arith.constant 0 : i32
    %c0_i32_0 = arith.constant 0 : i32
    return %arg0, %c0_i32 : i32, i32
  }
  func.func @transform_2(%arg0: i32) -> (i32, i32) {
    %c0_i32 = arith.constant 0 : i32
    %c0_i32_0 = arith.constant 0 : i32
    return %arg0, %c0_i32 : i32, i32
  }
}

</mosaic_0001>

<bundles_post_ra>
// kernel: tpu_custom_call.1
= control target key start
LH: loop header
LB: loop body
LE: loop exit
PB: predicated region body
PF: predicated region fallthrough
CT: control target
= control target key end

     0   :  { %7 = vsyncpa [#allocation5], 0  ;;  %s903_s0 = inlined_call_operand.hbm [shape: f32[2], index: 0, kind: input, shape index: {}]   ;;  %s904_s1 = inlined_call_operand.hbm [shape: f32[16,4096], index: 1, kind: input, shape index: {}]   ;;  %s905_s2 = inlined_call_operand.hbm [shape: f32[16,4096], index: 2, kind: output, shape index: {}]  }
   0x1   :  { %8 = vsyncpa [#allocation3], 0 }
   0x2   :  { %10 = vsyncpa [#allocation3 + $0x1], 0 }
   0x3   :  { %11 = vsyncpa [#allocation4], 0 }
   0x4   :  { %13 = vsyncpa [#allocation4 + $0x1], 0  ;;  %s604_s9 = smov 0   ;;  %s606_s10 = smov 0  }
   0x5   :  { %s608_s11 = smov 0   ;;  %s610_s12 = smov 0  }
   0x6 LB: > { %s625_s13 = sadd.s32 4294967295, %s584_s12   ;;  %s401_s14 = sadd.s32 4294967294, %s584_s12   ;;  %s584_s12 = sphi %s610_s12, %s925_s12   ;;  %s580_s11 = sphi %s608_s11, %s924_s11   ;;  %s576_s10 = sphi %s606_s10, %s923_s10   ;;  %s572_s9 = sphi %s604_s9, %s922_s9  }
   0x7   : > { %p60_p0 = scmp.ne.s32.totalorder %s576_s10, %s572_s9  ;;  %p906_p1 = scmp.eq.s32.totalorder %s625_s13, 0 }
   0x8   : > { %p84_p2 = scmp.eq.s32.totalorder %s625_s13, 1  ;;  %p90_p3 = scmp.eq.s32.totalorder %s401_s14, 1 }
   0x9   : > { %p634_p4 = por %p906_p1, %p60_p0  ;;  %p402_p5 = scmp.ge.s32.totalorder %s584_s12, 1 }
   0xa   : > { %p639_p6 = por %p90_p3, %p60_p0  ;;  %p97_p7 = scmp.lt.s32.totalorder %s584_s12, 3 }
   0xb   : > { %s910_s15 = scalar_select %p634_p4, 1, 0 }
   0xc   : > { %s911_s16 = scalar_select %p639_p6, 1, 0 }
   0xd   : > { %p644_p8 = pnand %p402_p5, %p97_p7  ;;  %s650_s18 = sadd.s32 1, %s584_s12  }
   0xe   : > { %s44_s19 = ssub.s32 %s584_s12, %s650_s18  ;;  %s47_s20 = sadd.s32 1, %s580_s11 }
   0xf   : > { %s912_s17 = scalar_select %p644_p8, 1, 0 }
  0x10   : > { %p428_p10 = pneg %p644_p8  ;;  %p45_p12 = scmp.eq.s32.totalorder %s44_s19, 0 }
  0x11   : > { %p54_p13 = scmp.ne.s32.totalorder %s580_s11, %s576_s10  ;;  %p55_p0 = scmp.eq.s32.totalorder %s584_s12, 0 }
  0x12   : > { %p429_p11 = pnand %p428_p10, %p906_p1  ;;  %p441_p3 = scmp.lt.s32.totalorder %s584_s12, 2 }
  0x13   : > { %s586_s21 = smov [#allocation2]   ;;  %p56_p5 = por %p55_p0, %p54_p13 }
  0x14   : > { %431 = dma.hbm_to_smem (!%p429_p11), %s903_s0, 16, %s586_s21, [#allocation5]  }
  0x15   : > { %s667_s24 = scalar_select %p45_p12, %s580_s11, %s47_s20  }
  0x16   : > { %p671_p7 = por %p84_p2, %p54_p13  ;;  %s119_s26 = sand.u32 1, %s580_s11  }
  0x17   : > { %s418_s27 = sshll.u32 %s584_s12, 12  ;;  %s405_s28 = sshll.u32 %s119_s26, 8 }
  0x18   : > { %s913_s25 = scalar_select %p671_p7, 1, 0 }
  0x19   : > { %s680_s3 = scalar_lea.hbm %s904_s1, %s418_s27  ;;  %s123_s4 = scalar_lea.vmem [#allocation6], %s405_s28 }
  0x1a   : > { %s131_s5 = sshll.u32 %s123_s4, 4  ;;  %p682_p10 = pnand %p441_p3, %p56_p5  ;;  %s132_s5 = int_to_ptr.vmem [resolvable:$true] %s131_s5 }
  0x1b   : > { %s120_s7 = scalar_lea.sflag [#allocation3], %s119_s26  ;;  %s488_s8 = scalar_lea.hbm %s680_s3, 4096 }
  0x1c   : > { %p489_p2 = scmp.ne.s32.totalorder %s680_s3, %s488_s8  ;;  %p490_p11 = pneg %p682_p10 }
  0x1d   : > { %s493_s20 = scalar_lea.hbm %s904_s1, 8192  ;;  %p494_p0 = scmp.lt.s32.totalorder %s680_s3, %s904_s1 }
  0x1e   : > { %p491_p12 = pnand %p490_p11, %p489_p2  ;;  %p495_p3 = scmp.lt.s32.totalorder %s493_s20, %s488_s8 }
  0x20   : > { %p492_p13 = pneg %p491_p12  ;;  %p496_p5 = por %p495_p3, %p494_p0 }
  0x22   : > { %p497_p9 = pnand %p496_p5, %p492_p13 }
  0x24   : > { %500 = shalt.err (!%p497_p9)
}
  0x25   : > { %s501_s23 = scalar_lea.vmem %s132_s5, 4096  ;;  %s587_s26 = smov [#allocation6]  }
  0x26   : > { %p502_p1 = scmp.ne.s32.totalorder %s132_s5, %s501_s23  ;;  %s506_s27 = sshll.u32 %s587_s26, 4  ;;  %s507_s27 = int_to_ptr.vmem [resolvable:$false] %s506_s27 }
  0x27   : > { %s508_s28 = scalar_lea.vmem %s507_s27, 8192  ;;  %p509_p2 = scmp.lt.s32.totalorder %s132_s5, %s507_s27 }
  0x28   : > { %p504_p6 = pnand %p502_p1, %p490_p11  ;;  %p510_p12 = scmp.lt.s32.totalorder %s508_s28, %s501_s23 }
  0x2a   : > { %p505_p7 = pneg %p504_p6  ;;  %p511_p4 = por %p510_p12, %p509_p2 }
  0x2c   : > { %p512_p8 = pnand %p511_p4, %p505_p7 }
  0x2e   : > { %515 = shalt.err (!%p512_p8)
}
  0x2f   : > { %435 = dma.hbm_to_vmem [thread:$0]  (!%p682_p10), %s680_s3, 4096, %s132_s5, %s120_s7  }
  0x30   : > { %p915_p13 = scmp.ne.s32.totalorder %s912_s17, 0 }
  0x31   : > { %p916_p9 = scmp.eq.s32.totalorder (!%p915_p13), %s625_s13, 0 }
  0x32   : > { %140 = sbr.rel (%p915_p13) target bundleno = 103 (0x67), region = 28 }
  0x37   : > { %559 = dma.done.wait (%p916_p9), [#allocation5], 16   ;;  %p917_p1 = pmov %p916_p9 }
  0x38   : > { %s707_s29 = sand.u32 1, %s576_s10   ;;  %p918_p4 = scmp.ne.s32.totalorder %s910_s15, 0 }
  0x39   : > { %561 = vsyncadd (%p917_p1), [#allocation5], 4294967280  ;;  %s410_s30 = sshll.u32 %s707_s29, 8  ;;  %s147_s4 = scalar_lea.sflag [#allocation3], %s707_s29 }
  0x3a   : > { %s713_s3 = scalar_lea.vmem [#allocation6], %s410_s30 }
  0x3b   : > { %563 = dma.done.wait (%p918_p4), %s147_s4, 4096  }
  0x3c   : > { %565 = vsyncadd (%p918_p4), %s147_s4, 4294963200 }
  0x3d   : > { %155 = sfence }
  0x3e   : > { %s172_s17 = sld [smem:[#allocation2]]  ;;  %v174_v0 = vld [vmem:[%s713_s3] sm:$0xff]  ;;  %v175_v1 = vld [vmem:[%s713_s3 + $0x8] sm:$0xff]  ;;  %v176_v2 = vld [vmem:[%s713_s3 + $0x10] sm:$0xff]  ;;  %s756_s15 = scalar_lea.vmem [#allocation7], %s410_s30 }
  0x3f   : > { %s412_s5 = sld [smem:[#allocation2 + $0x1]]  ;;  %v177_v3 = vld [vmem:[%s713_s3 + $0x18] sm:$0xff]  ;;  %v178_v4 = vld [vmem:[%s713_s3 + $0x20] sm:$0xff]  ;;  %v179_v5 = vld [vmem:[%s713_s3 + $0x28] sm:$0xff]  ;;  %s419_s6 = sshll.u32 %s625_s13, 12 }
  0x40   : > { %v180_v6 = vld [vmem:[%s713_s3 + $0x30] sm:$0xff]  ;;  %v181_v8 = vld [vmem:[%s713_s3 + $0x38] sm:$0xff]  ;;  %v182_v13 = vld [vmem:[%s713_s3 + $0x40] sm:$0xff]  ;;  %s319_s7 = sshll.u32 %s756_s15, 4  ;;  %s855_s14 = scalar_lea.hbm %s905_s2, %s419_s6  ;;  %s857_s7 = int_to_ptr.vmem [resolvable:$true] %s319_s7 }
  0x41   : > { %v183_v18 = vld [vmem:[%s713_s3 + $0x48] sm:$0xff]  ;;  %v184_v19 = vld [vmem:[%s713_s3 + $0x50] sm:$0xff]  ;;  %v185_v20 = vld [vmem:[%s713_s3 + $0x58] sm:$0xff]  ;;  %s305_s19 = scalar_lea.sflag [#allocation4], %s707_s29  ;;  %s516_s20 = scalar_lea.vmem %s857_s7, 4096 }
  0x42   : > { %v186_v25 = vld [vmem:[%s713_s3 + $0x60] sm:$0xff]  ;;  %v187_v26 = vld [vmem:[%s713_s3 + $0x68] sm:$0xff]  ;;  %v188_v27 = vld [vmem:[%s713_s3 + $0x70] sm:$0xff]  ;;  %p517_p6 = scmp.ne.s32.totalorder %s857_s7, %s516_s20  ;;  %p919_p8 = scmp.ne.s32.totalorder %s913_s25, 0 }
  0x43   : > { %v189_v32 = vld [vmem:[%s713_s3 + $0x78] sm:$0xff]  ;;  %v190_v37 = vld [vmem:[%s713_s3 + $0x80] sm:$0xff]  ;;  %v191_v42 = vld [vmem:[%s713_s3 + $0x88] sm:$0xff]  ;;  %s588_s21 = smov [#allocation7]  }
  0x44   : > { %v726_v7 = vstv %s172_s17  ;;  %v192_v43 = vld [vmem:[%s713_s3 + $0x90] sm:$0xff]  ;;  %v193_v44 = vld [vmem:[%s713_s3 + $0x98] sm:$0xff]  ;;  %v194_v49 = vld [vmem:[%s713_s3 + $0xa0] sm:$0xff]  ;;  %p518_p7 = pnand %p517_p6, %p919_p8  ;;  %s520_s22 = sshll.u32 %s588_s21, 4  ;;  %s521_s22 = int_to_ptr.vmem [resolvable:$false] %s520_s22 }
  0x45   : > { %v207_v9 = vmul.f32 %v726_v7, %v174_v0  ;;  %v730_v10 = vstv %s412_s5  ;;  %v208_v11 = vmul.f32 %v726_v7, %v175_v1  ;;  %v209_v12 = vmul.f32 %v726_v7, %v176_v2  ;;  %v195_v50 = vld [vmem:[%s713_s3 + $0xa8] sm:$0xff]  ;;  %v196_v51 = vld [vmem:[%s713_s3 + $0xb0] sm:$0xff]  ;;  %v197_v56 = vld [vmem:[%s713_s3 + $0xb8] sm:$0xff]  ;;  %s522_s23 = scalar_lea.vmem %s521_s22, 8192  ;;  %p523_p11 = scmp.lt.s32.totalorder %s857_s7, %s521_s22 }
  0x46   : > { %v210_v14 = vmul.f32 %v726_v7, %v177_v3  ;;  %v211_v15 = vmul.f32 %v726_v7, %v178_v4  ;;  %v212_v16 = vmul.f32 %v726_v7, %v179_v5  ;;  %v213_v17 = vmul.f32 %v726_v7, %v180_v6  ;;  %v198_v61 = vld [vmem:[%s713_s3 + $0xc0] sm:$0xff]  ;;  %v199_v2 = vld [vmem:[%s713_s3 + $0xc8] sm:$0xff]  ;;  %v200_v3 = vld [vmem:[%s713_s3 + $0xd0] sm:$0xff]  ;;  %p519_p10 = pneg %p518_p7  ;;  %p524_p0 = scmp.lt.s32.totalorder %s522_s23, %s516_s20 }
  0x47   : > { %v240_v21 = vadd.f32 %v730_v10, %v207_v9  ;;  %v241_v22 = vadd.f32 %v730_v10, %v208_v11  ;;  %v242_v23 = vadd.f32 %v730_v10, %v209_v12  ;;  %v214_v24 = vmul.f32 %v726_v7, %v181_v8  ;;  %v201_v4 = vld [vmem:[%s713_s3 + $0xd8] sm:$0xff]  ;;  %v202_v11 = vld [vmem:[%s713_s3 + $0xe0] sm:$0xff]  ;;  %v203_v12 = vld [vmem:[%s713_s3 + $0xe8] sm:$0xff] }
  0x48   : > { %v243_v28 = vadd.f32 %v730_v10, %v210_v14  ;;  %v244_v29 = vadd.f32 %v730_v10, %v211_v15  ;;  %v245_v30 = vadd.f32 %v730_v10, %v212_v16  ;;  %v246_v31 = vadd.f32 %v730_v10, %v213_v17  ;;  %p525_p3 = por %p524_p0, %p523_p11 }
  0x49   : > { %272 = vst [vmem:[%s756_s15] sm:$0xff] %v240_v21  ;;  %273 = vst [vmem:[%s756_s15 + $0x8] sm:$0xff] %v241_v22  ;;  %v247_v33 = vadd.f32 %v730_v10, %v214_v24  ;;  %v215_v34 = vmul.f32 %v726_v7, %v182_v13  ;;  %v216_v35 = vmul.f32 %v726_v7, %v183_v18  ;;  %v204_v13 = vld [vmem:[%s713_s3 + $0xf0] sm:$0xff]  ;;  %v205_v18 = vld [vmem:[%s713_s3 + $0xf8] sm:$0xff] }
  0x4a   : > { %274 = vst [vmem:[%s756_s15 + $0x10] sm:$0xff] %v242_v23  ;;  %v217_v36 = vmul.f32 %v726_v7, %v184_v19  ;;  %275 = vst [vmem:[%s756_s15 + $0x18] sm:$0xff] %v243_v28  ;;  %v218_v38 = vmul.f32 %v726_v7, %v185_v20  ;;  %v219_v39 = vmul.f32 %v726_v7, %v186_v25  ;;  %p526_p5 = pnand %p525_p3, %p519_p10 }
  0x4b   : > { %276 = vst [vmem:[%s756_s15 + $0x20] sm:$0xff] %v244_v29  ;;  %277 = vst [vmem:[%s756_s15 + $0x28] sm:$0xff] %v245_v30  ;;  %v220_v40 = vmul.f32 %v726_v7, %v187_v26  ;;  %v221_v41 = vmul.f32 %v726_v7, %v188_v27  ;;  %v248_v45 = vadd.f32 %v730_v10, %v215_v34 }
  0x4c   : > { %278 = vst [vmem:[%s756_s15 + $0x30] sm:$0xff] %v246_v31  ;;  %279 = vst [vmem:[%s756_s15 + $0x38] sm:$0xff] %v247_v33  ;;  %v249_v46 = vadd.f32 %v730_v10, %v216_v35  ;;  %v250_v47 = vadd.f32 %v730_v10, %v217_v36  ;;  %v222_v48 = vmul.f32 %v726_v7, %v189_v32 }
  0x4d   : > { %v251_v52 = vadd.f32 %v730_v10, %v218_v38  ;;  %v252_v53 = vadd.f32 %v730_v10, %v219_v39  ;;  %v253_v54 = vadd.f32 %v730_v10, %v220_v40  ;;  %v254_v55 = vadd.f32 %v730_v10, %v221_v41  ;;  %280 = vst [vmem:[%s756_s15 + $0x40] sm:$0xff] %v248_v45 }
  0x4e   : > { %281 = vst [vmem:[%s756_s15 + $0x48] sm:$0xff] %v249_v46  ;;  %282 = vst [vmem:[%s756_s15 + $0x50] sm:$0xff] %v250_v47  ;;  %v255_v57 = vadd.f32 %v730_v10, %v222_v48  ;;  %v223_v58 = vmul.f32 %v726_v7, %v190_v37  ;;  %v224_v59 = vmul.f32 %v726_v7, %v191_v42 }
  0x4f   : > { %v225_v60 = vmul.f32 %v726_v7, %v192_v43  ;;  %283 = vst [vmem:[%s756_s15 + $0x58] sm:$0xff] %v251_v52  ;;  %284 = vst [vmem:[%s756_s15 + $0x60] sm:$0xff] %v252_v53  ;;  %v226_v62 = vmul.f32 %v726_v7, %v193_v44  ;;  %v227_v63 = vmul.f32 %v726_v7, %v194_v49 }
  0x50   : > { %285 = vst [vmem:[%s756_s15 + $0x68] sm:$0xff] %v253_v54  ;;  %286 = vst [vmem:[%s756_s15 + $0x70] sm:$0xff] %v254_v55  ;;  %v228_v0 = vmul.f32 %v726_v7, %v195_v50  ;;  %v229_v1 = vmul.f32 %v726_v7, %v196_v51  ;;  %v256_v5 = vadd.f32 %v730_v10, %v223_v58 }
  0x51   : > { %287 = vst [vmem:[%s756_s15 + $0x78] sm:$0xff] %v255_v57  ;;  %v257_v6 = vadd.f32 %v730_v10, %v224_v59  ;;  %v258_v8 = vadd.f32 %v730_v10, %v225_v60  ;;  %v230_v9 = vmul.f32 %v726_v7, %v197_v56  ;;  %v259_v14 = vadd.f32 %v730_v10, %v226_v62 }
  0x52   : > { %v260_v15 = vadd.f32 %v730_v10, %v227_v63  ;;  %v261_v16 = vadd.f32 %v730_v10, %v228_v0  ;;  %v262_v17 = vadd.f32 %v730_v10, %v229_v1  ;;  %288 = vst [vmem:[%s756_s15 + $0x80] sm:$0xff] %v256_v5  ;;  %v231_v20 = vmul.f32 %v726_v7, %v198_v61 }
  0x53   : > { %289 = vst [vmem:[%s756_s15 + $0x88] sm:$0xff] %v257_v6  ;;  %290 = vst [vmem:[%s756_s15 + $0x90] sm:$0xff] %v258_v8  ;;  %v263_v19 = vadd.f32 %v730_v10, %v230_v9  ;;  %v232_v21 = vmul.f32 %v726_v7, %v199_v2  ;;  %v233_v22 = vmul.f32 %v726_v7, %v200_v3 }
  0x54   : > { %291 = vst [vmem:[%s756_s15 + $0x98] sm:$0xff] %v259_v14  ;;  %292 = vst [vmem:[%s756_s15 + $0xa0] sm:$0xff] %v260_v15  ;;  %v234_v23 = vmul.f32 %v726_v7, %v201_v4  ;;  %v235_v24 = vmul.f32 %v726_v7, %v202_v11  ;;  %v236_v25 = vmul.f32 %v726_v7, %v203_v12 }
  0x55   : > { %293 = vst [vmem:[%s756_s15 + $0xa8] sm:$0xff] %v261_v16  ;;  %294 = vst [vmem:[%s756_s15 + $0xb0] sm:$0xff] %v262_v17  ;;  %v237_v26 = vmul.f32 %v726_v7, %v204_v13  ;;  %v264_v27 = vadd.f32 %v730_v10, %v231_v20  ;;  %v265_v28 = vadd.f32 %v730_v10, %v232_v21 }
  0x56   : > { %295 = vst [vmem:[%s756_s15 + $0xb8] sm:$0xff] %v263_v19  ;;  %v266_v29 = vadd.f32 %v730_v10, %v233_v22  ;;  %v238_v30 = vmul.f32 %v726_v7, %v205_v18  ;;  %v267_v31 = vadd.f32 %v730_v10, %v234_v23  ;;  %v268_v32 = vadd.f32 %v730_v10, %v235_v24 }
  0x57   : > { %v269_v33 = vadd.f32 %v730_v10, %v236_v25  ;;  %v270_v34 = vadd.f32 %v730_v10, %v237_v26  ;;  %296 = vst [vmem:[%s756_s15 + $0xc0] sm:$0xff] %v264_v27  ;;  %297 = vst [vmem:[%s756_s15 + $0xc8] sm:$0xff] %v265_v28 }
  0x58   : > { %298 = vst [vmem:[%s756_s15 + $0xd0] sm:$0xff] %v266_v29  ;;  %v271_v35 = vadd.f32 %v730_v10, %v238_v30  ;;  %299 = vst [vmem:[%s756_s15 + $0xd8] sm:$0xff] %v267_v31 }
  0x59   : > { %300 = vst [vmem:[%s756_s15 + $0xe0] sm:$0xff] %v268_v32  ;;  %301 = vst [vmem:[%s756_s15 + $0xe8] sm:$0xff] %v269_v33 }
  0x5a   : > { %302 = vst [vmem:[%s756_s15 + $0xf0] sm:$0xff] %v270_v34  ;;  %303 = vst [vmem:[%s756_s15 + $0xf8] sm:$0xff] %v271_v35 }
  0x5b   : > { %529 = shalt.err (!%p526_p5)
}
  0x5c   : > { %s530_s26 = scalar_lea.hbm %s855_s14, 4096  ;;  %s534_s29 = scalar_lea.hbm %s905_s2, 8192 }
  0x5d   : > { %p531_p2 = scmp.ne.s32.totalorder %s855_s14, %s530_s26  ;;  %p535_p9 = scmp.lt.s32.totalorder %s855_s14, %s905_s2 }
  0x5e   : > { %p536_p1 = scmp.lt.s32.totalorder %s534_s29, %s530_s26 }
  0x5f   : > { %p532_p12 = pnand %p531_p2, %p919_p8 }
  0x60   : > { %p537_p4 = por %p536_p1, %p535_p9 }
  0x61   : > { %p533_p13 = pneg %p532_p12 }
  0x63   : > { %p538_p6 = pnand %p537_p4, %p533_p13 }
  0x65   : > { %541 = shalt.err (!%p538_p6)
}
  0x66   : > { %426 = dma.vmem_to_hbm [thread:$0]  (%p919_p8), %s857_s7, 4096, %s855_s14, %s305_s19  }
  0x67 PF: > { %s331_s3 = sand.u32 1, %s572_s9   ;;  %p920_p7 = scmp.ne.s32.totalorder %s911_s16, 0 }
  0x68   : > { %p921_p10 = scmp.ge.s32.totalorder %s584_s12, 2  ;;  %s332_s17 = scalar_lea.sflag [#allocation4], %s331_s3 }
  0x6a   : > { %p437_p11 = pnand %p921_p10, %p920_p7 }
  0x6c   : > { %p438_p0 = pneg %p437_p11 }
  0x6e   : > { %567 = dma.done.wait (%p438_p0), %s332_s17, 4096  }
  0x6f   : > { %569 = vsyncadd (%p438_p0), %s332_s17, 4294963200  ;;  %p16_p3 = scmp.ge.s32.totalorder %s650_s18, 4   ;;  %s922_s9 = smov %s576_s10 }
  0x70   : > { %s923_s10 = smov %s580_s11  ;;  %s924_s11 = smov %s667_s24 }
  0x71   : > { %s925_s12 = smov %s650_s18  ;;  %18 = sbr.rel (!%p16_p3) target bundleno = 6 (0x6), region = 78 }
  0x76   :  { %337 = vsyncpa [#allocation3], 1 }
  0x77   :  { %339 = vsyncpa [#allocation3 + $0x1], 1 }
  0x78   :  { %340 = vsyncpa [#allocation4], 1 }
  0x79   :  { %342 = vsyncpa [#allocation4 + $0x1], 1 }
  0x7a   :  { %343 = vsyncpa [#allocation5], 1 }
  0x7b   :  { %345 = vsyncpa [#allocation5 + $0x1], 1 }

</bundles_post_ra>
